<compile_context>
chip_gen: v7x
topology: tpu7x:2x2x1
jax: 0.10.0
libtpu: 0.0.40
codegen_flags: <defaults>
</compile_context>

<pallas_src>
import jax
import jax.numpy as jnp
from jax.experimental import pallas as pl
from jax.experimental.pallas import tpu as pltpu


# ---------------------------------------------------------------------------
# Zero-copy aliased identity: the output buffer *is* the input buffer.
# ---------------------------------------------------------------------------
def _identity_alias_kernel(x_hbm_ref, o_hbm_ref):
    # Output is aliased to the input (input_output_aliases={0: 0}), so it
    # already holds x.  Nothing to compute, nothing to DMA.
    del x_hbm_ref, o_hbm_ref


def _identity_aliased(x: jax.Array) -> jax.Array:
    if x.size == 0:
        # Aliasing semantics: return the same (empty) buffer.
        return x
    return pl.pallas_call(
        _identity_alias_kernel,
        out_shape=jax.ShapeDtypeStruct(x.shape, x.dtype),
        # Both operands stay in HBM; nothing is staged through VMEM.
        in_specs=[pl.BlockSpec(memory_space=pl.ANY)],
        out_specs=pl.BlockSpec(memory_space=pl.ANY),
        input_output_aliases={0: 0},
    )(x)


# Donate the argument so XLA realizes the alias without a protective copy.
# NOTE: callers must not reuse the donated input array afterwards.
identity = jax.jit(_identity_aliased, donate_argnums=0)


# ---------------------------------------------------------------------------
# Fresh-buffer identity: single HBM->HBM DMA copy (when donation is not
# allowed and the caller requires a distinct output buffer).
# ---------------------------------------------------------------------------
def _identity_copy_kernel(x_hbm_ref, o_hbm_ref, sem):
    cp = pltpu.make_async_copy(x_hbm_ref, o_hbm_ref, sem)
    cp.start()
    cp.wait()


def identity_copy(x: jax.Array) -> jax.Array:
    if x.size == 0:
        # Keep the fresh-buffer contract consistent with the main path.
        return jnp.array(x, copy=True)
    return pl.pallas_call(
        _identity_copy_kernel,
        out_shape=jax.ShapeDtypeStruct(x.shape, x.dtype),
        in_specs=[pl.BlockSpec(memory_space=pl.ANY)],
        out_specs=pl.BlockSpec(memory_space=pl.ANY),
        # Explicit call form (portable spelling) for a single DMA semaphore.
        scratch_shapes=[pltpu.SemaphoreType.DMA(())],
    )(x)


if __name__ == "__main__":
    key = jax.random.PRNGKey(0)
    shape, dtype = (2, 4, 16, 16), jnp.float32

    # Reference values in an independent buffer (same key -> same values).
    x_expected = jax.random.normal(key, shape, dtype=dtype)

    # 1) Zero-copy aliased path (input buffer is donated; `x` must not be
    #    used afterwards).
    x = jax.random.normal(key, shape, dtype=dtype)
    y = jax.block_until_ready(identity(x))
    assert y.shape == shape
    assert y.dtype == dtype
    assert bool(jnp.all(y == x_expected))

    # 2) Fresh-buffer copy path (no donation; `x2` stays valid).
    x2 = jax.random.normal(key, shape, dtype=dtype)
    y2 = jax.block_until_ready(identity_copy(x2))
    assert y2.shape == shape
    assert y2.dtype == dtype
    assert bool(jnp.all(y2 == x2))

    print("KERNEL_OK")
</pallas_src>

<mosaic_0001>
module attributes {stable_mosaic.version = 11 : i64} {
  func.func @_identity_alias_kernel(%arg0: memref<2x4x16x16xf32, #tpu.memory_space<any>>, %arg1: memref<2x4x16x16xf32, #tpu.memory_space<any>>) attributes {dimension_semantics = [], scalar_prefetch = 0 : i64, scratch_operands = 0 : i64, tpu.core_type = #tpu.core_type<tc>} {
    return
  }
}

</mosaic_0001>

<bundles_post_ra>
// kernel: _identity_aliased.1
= control target key start
LH: loop header
LB: loop body
LE: loop exit
PB: predicated region body
PF: predicated region fallthrough
CT: control target
= control target key end

     0   :  { %s16_s0 = inlined_call_operand.hbm [shape: f32[2,4,16,16], index: 0, kind: input, shape index: {}, may-alias: {0,1}]   ;;  %s17_s1 = inlined_call_operand.hbm [shape: f32[2,4,16,16], index: 1, kind: output, shape index: {}, may-alias: {0,1}]  }

</bundles_post_ra>
